<compile_context>
chip_gen: v7x
topology: tpu7x:2x2x1
jax: 0.10.0
libtpu: 0.0.40
codegen_flags: <defaults>
</compile_context>

<pallas_src>
import functools

import jax
import jax.numpy as jnp
from jax.experimental import pallas as pl
from jax.experimental.pallas import tpu as pltpu

EPS = 1e-5
MOMENTUM = 0.9

TILE_BYTES = 4 * 1024 * 1024          # target bytes of x per grid step (all gens)
VMEM_LIMIT = 48 * 1024 * 1024         # fits v7x 64 MiB physical; >> v5e 16 MiB default


# ------------------------------ tile helpers -------------------------------- #

def _pick_tile(dim, unit, cap):
    """Largest t <= cap with t % unit == 0 and dim % t == 0.
    Falls back to the full dim (a full-extent block is always legal)."""
    if dim <= cap:
        return dim
    if dim % unit == 0:
        t = (cap // unit) * unit
        while t >= unit:
            if dim % t == 0:
                return t
            t -= unit
    return dim


def _largest_divisor(n, cap):
    cap = max(1, min(n, cap))
    for d in range(cap, 0, -1):
        if n % d == 0:
            return d
    return 1


# ----------------------------- kernels ------------------------------------- #

def _stats_kernel_nchw(x_ref, s_ref, q_ref):
    # x_ref: (nb, ct, hwt); s_ref/q_ref: (1, ct, 1) f32 partial sums that stay
    # resident across the H*W reduction grid axis (same out block index).
    @pl.when(pl.program_id(2) == 0)
    def _():
        s_ref[...] = jnp.zeros_like(s_ref)
        q_ref[...] = jnp.zeros_like(q_ref)

    x = x_ref[...].astype(jnp.float32)                      # (nb, ct, hwt)
    s_ref[...] += jnp.sum(x, axis=(0, 2), keepdims=True)
    q_ref[...] += jnp.sum(x * x, axis=(0, 2), keepdims=True)


def _stats_kernel_2d(x_ref, s_ref, q_ref):
    # x_ref: (mt, ct); s_ref/q_ref: (1, ct) f32 accumulators resident across M.
    @pl.when(pl.program_id(1) == 0)
    def _():
        s_ref[...] = jnp.zeros_like(s_ref)
        q_ref[...] = jnp.zeros_like(q_ref)

    x = x_ref[...].astype(jnp.float32)
    s_ref[...] += jnp.sum(x, axis=0, keepdims=True)
    q_ref[...] += jnp.sum(x * x, axis=0, keepdims=True)


def _norm_kernel(s_ref, q_ref, g_ref, b_ref, x_ref, y_ref, *, inv_count, eps):
    # Fused finalize + normalize. s/q/g/b blocks are (ct, 1) [NCHW] or (1, ct)
    # [2D]; x block is (nb, ct, hwt) or (mt, ct). Finalize is O(ct) per step
    # (negligible vs the multi-MiB stream); main path is one mul + add / elem.
    mean = s_ref[...] * inv_count
    var = jnp.maximum(q_ref[...] * inv_count - mean * mean, 0.0)
    scale = g_ref[...] * jax.lax.rsqrt(var + eps)
    shift = b_ref[...] - mean * scale
    x = x_ref[...].astype(jnp.float32)
    y_ref[...] = (x * scale + shift).astype(y_ref.dtype)


# --------------------------- pallas_call wrappers --------------------------- #

def _stats_nchw(x3, nb, ct, hwt):
    N, C, HWp = x3.shape
    NB = N // nb
    itemsize = x3.dtype.itemsize
    cost = pl.CostEstimate(flops=int(3 * N * C * HWp), transcendentals=0,
                           bytes_accessed=int(N * C * HWp * itemsize + 2 * NB * C * 4))
    return pl.pallas_call(
        _stats_kernel_nchw,
        out_shape=(jax.ShapeDtypeStruct((NB, C, 1), jnp.float32),
                   jax.ShapeDtypeStruct((NB, C, 1), jnp.float32)),
        grid=(NB, C // ct, HWp // hwt),
        in_specs=[pl.BlockSpec((nb, ct, hwt), lambda n, c, hw: (n, c, hw))],
        out_specs=(pl.BlockSpec((1, ct, 1), lambda n, c, hw: (n, c, 0)),
                   pl.BlockSpec((1, ct, 1), lambda n, c, hw: (n, c, 0))),
        compiler_params=pltpu.CompilerParams(
            dimension_semantics=("parallel", "parallel", "arbitrary"),
            vmem_limit_bytes=VMEM_LIMIT),
        cost_estimate=cost,
    )(x3)


def _normalize_nchw(x3, s_tot, q_tot, g, b, nb, ct, hwt, inv_count, eps):
    N, C, HWp = x3.shape
    itemsize = x3.dtype.itemsize
    cost = pl.CostEstimate(flops=int(2 * N * C * HWp), transcendentals=int(C),
                           bytes_accessed=int(2 * N * C * HWp * itemsize + 4 * C * 4))
    kern = functools.partial(_norm_kernel, inv_count=inv_count, eps=eps)
    small = pl.BlockSpec((ct, 1), lambda n, c, hw: (c, 0))
    big = pl.BlockSpec((nb, ct, hwt), lambda n, c, hw: (n, c, hw))
    return pl.pallas_call(
        kern,
        out_shape=jax.ShapeDtypeStruct((N, C, HWp), x3.dtype),
        grid=(N // nb, C // ct, HWp // hwt),
        in_specs=[small, small, small, small, big],
        out_specs=big,
        compiler_params=pltpu.CompilerParams(
            dimension_semantics=("parallel", "parallel", "parallel"),
            vmem_limit_bytes=VMEM_LIMIT),
        cost_estimate=cost,
    )(s_tot, q_tot, g, b, x3)


def _stats_2d(x2, mt, ct):
    M, C = x2.shape
    itemsize = x2.dtype.itemsize
    cost = pl.CostEstimate(flops=int(3 * M * C), transcendentals=0,
                           bytes_accessed=int(M * C * itemsize + 2 * C * 4))
    return pl.pallas_call(
        _stats_kernel_2d,
        out_shape=(jax.ShapeDtypeStruct((1, C), jnp.float32),
                   jax.ShapeDtypeStruct((1, C), jnp.float32)),
        grid=(C // ct, M // mt),
        in_specs=[pl.BlockSpec((mt, ct), lambda c, m: (m, c))],
        out_specs=(pl.BlockSpec((1, ct), lambda c, m: (0, c)),
                   pl.BlockSpec((1, ct), lambda c, m: (0, c))),
        compiler_params=pltpu.CompilerParams(
            dimension_semantics=("parallel", "arbitrary"),
            vmem_limit_bytes=VMEM_LIMIT),
        cost_estimate=cost,
    )(x2)


def _normalize_2d(x2, s_tot, q_tot, g, b, mt, ct, inv_count, eps):
    M, C = x2.shape
    itemsize = x2.dtype.itemsize
    cost = pl.CostEstimate(flops=int(2 * M * C), transcendentals=int(C),
                           bytes_accessed=int(2 * M * C * itemsize + 4 * C * 4))
    kern = functools.partial(_norm_kernel, inv_count=inv_count, eps=eps)
    small = pl.BlockSpec((1, ct), lambda c, m: (0, c))
    big = pl.BlockSpec((mt, ct), lambda c, m: (m, c))
    return pl.pallas_call(
        kern,
        out_shape=jax.ShapeDtypeStruct((M, C), x2.dtype),
        grid=(C // ct, M // mt),
        in_specs=[small, small, small, small, big],
        out_specs=big,
        compiler_params=pltpu.CompilerParams(
            dimension_semantics=("parallel", "parallel"),
            vmem_limit_bytes=VMEM_LIMIT),
        cost_estimate=cost,
    )(s_tot, q_tot, g, b, x2)


# ------------------------------ public API ---------------------------------- #

def batch_norm_forward(x, gamma, beta, moving_mean, moving_var,
                       eps=EPS, momentum=MOMENTUM):
    """Training-mode BatchNorm forward matching the PyTorch module.

    x: (N, C) or (N, C, H, W) NCHW.
    gamma/beta/moving_mean/moving_var: (1, C) or (1, C, 1, 1).
    Returns (Y, new_moving_mean, new_moving_var) with matching shapes/dtypes.
    """
    assert x.ndim in (2, 4)
    budget = max(128, TILE_BYTES // x.dtype.itemsize)   # elements of x per step

    if x.ndim == 4:
        N, C, H, W = x.shape
        HW = H * W
        HWp = -(-HW // 128) * 128                       # lane-dense pad target
        x3 = x.reshape(N, C, HW)                        # free reshape, no transpose
        if HWp != HW:
            # TODO(synk): padding costs one extra copy of x/y; a masked-store
            # path would avoid it for very small feature maps.
            x3 = jnp.pad(x3, ((0, 0), (0, 0), (0, HWp - HW)))

        hwt = _pick_tile(HWp, 128, budget)                        # lane axis
        ct = _pick_tile(C, 8, max(1, budget // hwt))              # sublane axis
        if ct * hwt > budget:                                     # full-C fallback
            hwt = _pick_tile(HWp, 128, max(128, budget // ct))
        nb = _largest_divisor(N, max(1, budget // (ct * hwt)))    # images / step

        s_p, q_p = _stats_nchw(x3, nb, ct, hwt)         # (NB, C, 1) f32 partials
        s_tot = jnp.sum(s_p, axis=0)                    # (C, 1)
        q_tot = jnp.sum(q_p, axis=0)
        inv_count = 1.0 / float(N * HW)                 # true count (pad is zeros)
        g = gamma.reshape(C, 1).astype(jnp.float32)
        b = beta.reshape(C, 1).astype(jnp.float32)

        y3 = _normalize_nchw(x3, s_tot, q_tot, g, b, nb, ct, hwt,
                             inv_count, float(eps))
        if HWp != HW:
            y3 = y3[:, :, :HW]
        y = y3.reshape(N, C, H, W)

        mean = s_tot[:, 0] * inv_count                              # (C,)
        var = jnp.maximum(q_tot[:, 0] * inv_count - mean * mean, 0.0)
    else:
        M, C = x.shape
        ct = _pick_tile(C, 128, budget)                             # lane axis
        mt = _pick_tile(M, 8, max(1, budget // ct))                 # sublane axis

        s_tot, q_tot = _stats_2d(x, mt, ct)             # (1, C) f32 each
        inv_count = 1.0 / float(M)
        g = gamma.reshape(1, C).astype(jnp.float32)
        b = beta.reshape(1, C).astype(jnp.float32)

        y = _normalize_2d(x, s_tot, q_tot, g, b, mt, ct, inv_count, float(eps))

        mean = s_tot[0] * inv_count
        var = jnp.maximum(q_tot[0] * inv_count - mean * mean, 0.0)

    # Moving-stat update with the module's semantics (momentum=0.9, biased batch
    # variance, new = momentum*old + (1-momentum)*batch); preserve caller dtype.
    # TODO(synk): torch.nn.BatchNorm2d uses the momentum=0.1 convention + unbiased
    # var; this matches the provided d2l-style batch_norm() spec, not nn.BatchNorm2d.
    new_mm = (momentum * moving_mean.astype(jnp.float32)
              + (1.0 - momentum) * mean.reshape(moving_mean.shape)
              ).astype(moving_mean.dtype)
    new_mv = (momentum * moving_var.astype(jnp.float32)
              + (1.0 - momentum) * var.reshape(moving_var.shape)
              ).astype(moving_var.dtype)
    return y, new_mm, new_mv


# ------------------------------ reference ----------------------------------- #

def _reference_bn(x, gamma, beta, moving_mean, moving_var,
                  eps=EPS, momentum=MOMENTUM):
    axes = (0, 2, 3) if x.ndim == 4 else (0,)
    mean = jnp.mean(x, axis=axes, keepdims=True)
    var = jnp.mean((x - mean) ** 2, axis=axes, keepdims=True)
    x_hat = (x - mean) / jnp.sqrt(var + eps)
    y = gamma.reshape(mean.shape) * x_hat + beta.reshape(mean.shape)
    nmm = momentum * moving_mean + (1.0 - momentum) * mean.reshape(moving_mean.shape)
    nmv = momentum * moving_var + (1.0 - momentum) * var.reshape(moving_var.shape)
    return y, nmm, nmv


if __name__ == "__main__":
    key = jax.random.PRNGKey(0)
    k4, k2, k5 = jax.random.split(key, 3)

    # 4D NCHW case: BatchNorm(num_features=4, num_dims=4)
    N, C, H, W = 2, 4, 16, 16
    x4 = jax.random.normal(k4, (N, C, H, W), dtype=jnp.float32)
    gamma4 = jnp.ones((1, C, 1, 1), jnp.float32)
    beta4 = jnp.zeros((1, C, 1, 1), jnp.float32)
    mm4 = jnp.zeros((1, C, 1, 1), jnp.float32)
    mv4 = jnp.zeros((1, C, 1, 1), jnp.float32)

    y4, nmm4, nmv4 = batch_norm_forward(x4, gamma4, beta4, mm4, mv4)
    jax.block_until_ready((y4, nmm4, nmv4))
    y4r, nmm4r, nmv4r = _reference_bn(x4, gamma4, beta4, mm4, mv4)
    assert jnp.allclose(y4, y4r, atol=1e-4, rtol=1e-4)
    assert jnp.allclose(nmm4, nmm4r, atol=1e-5, rtol=1e-5)
    assert jnp.allclose(nmv4, nmv4r, atol=1e-5, rtol=1e-5)

    # 2D case: BatchNorm(num_features=32, num_dims=2)
    M2, C2 = 16, 32
    x2 = jax.random.normal(k2, (M2, C2), dtype=jnp.float32)
    gamma2 = jnp.ones((1, C2), jnp.float32)
    beta2 = jnp.zeros((1, C2), jnp.float32)
    mm2 = jnp.zeros((1, C2), jnp.float32)
    mv2 = jnp.zeros((1, C2), jnp.float32)

    y2, nmm2, nmv2 = batch_norm_forward(x2, gamma2, beta2, mm2, mv2)
    jax.block_until_ready((y2, nmm2, nmv2))
    y2r, nmm2r, nmv2r = _reference_bn(x2, gamma2, beta2, mm2, mv2)
    assert jnp.allclose(y2, y2r, atol=1e-4, rtol=1e-4)
    assert jnp.allclose(nmm2, nmm2r, atol=1e-5, rtol=1e-5)
    assert jnp.allclose(nmv2, nmv2r, atol=1e-5, rtol=1e-5)

    # 4D case with H*W not a multiple of 128 (exercises lane padding path).
    N5, C5, H5, W5 = 2, 8, 5, 5
    x5 = jax.random.normal(k5, (N5, C5, H5, W5), dtype=jnp.float32)
    gamma5 = jnp.ones((1, C5, 1, 1), jnp.float32)
    beta5 = jnp.zeros((1, C5, 1, 1), jnp.float32)
    mm5 = jnp.zeros((1, C5, 1, 1), jnp.float32)
    mv5 = jnp.zeros((1, C5, 1, 1), jnp.float32)

    y5, nmm5, nmv5 = batch_norm_forward(x5, gamma5, beta5, mm5, mv5)
    jax.block_until_ready((y5, nmm5, nmv5))
    y5r, nmm5r, nmv5r = _reference_bn(x5, gamma5, beta5, mm5, mv5)
    assert jnp.allclose(y5, y5r, atol=1e-4, rtol=1e-4)
    assert jnp.allclose(nmm5, nmm5r, atol=1e-5, rtol=1e-5)
    assert jnp.allclose(nmv5, nmv5r, atol=1e-5, rtol=1e-5)

    print("KERNEL_OK")
</pallas_src>

<mosaic_0001>
module attributes {stable_mosaic.version = 11 : i64} {
  func.func @_stats_kernel_nchw(%arg0: i32, %arg1: i32, %arg2: i32, %arg3: memref<2x4x256xf32, #tpu.memory_space<vmem>>, %arg4: memref<1x4x1xf32, #tpu.memory_space<vmem>>, %arg5: memref<1x4x1xf32, #tpu.memory_space<vmem>>) attributes {dimension_semantics = [#tpu.dimension_semantics<parallel>, #tpu.dimension_semantics<parallel>, #tpu.dimension_semantics<arbitrary>], iteration_bounds = array<i64: 1, 1, 1>, scalar_prefetch = 0 : i64, scratch_operands = 0 : i64, tpu.core_type = #tpu.core_type<tc>, window_params = [{transform_indices = @transform_0, window_bounds = array<i64: 2, 4, 256>}, {transform_indices = @transform_1, window_bounds = array<i64: 1, 4, 1>}, {transform_indices = @transform_2, window_bounds = array<i64: 1, 4, 1>}]} {
    %c0_i32 = arith.constant 0 : i32
    %0 = arith.cmpi eq, %arg2, %c0_i32 : i32
    %1 = arith.extui %0 : i1 to i32
    %c0_i32_0 = arith.constant 0 : i32
    %2 = arith.cmpi ne, %1, %c0_i32_0 : i32
    scf.if %2 {
      %cst_16 = arith.constant 0.000000e+00 : f32
      %15 = vector.broadcast %cst_16 : f32 to vector<1x4x1xf32>
      %c0_17 = arith.constant 0 : index
      %c0_18 = arith.constant 0 : index
      %c0_19 = arith.constant 0 : index
      %16 = vector.load %arg4[%c0_17, %c0_18, %c0_19] : memref<1x4x1xf32, #tpu.memory_space<vmem>>, vector<1x4x1xf32>
      tpu.vector_store %arg4[%c0_17, %c0_18, %c0_19], %15 {strides = array<i32>} : memref<1x4x1xf32, #tpu.memory_space<vmem>>, vector<1x4x1xf32>,
      %cst_20 = arith.constant 0.000000e+00 : f32
      %17 = vector.broadcast %cst_20 : f32 to vector<1x4x1xf32>
      %c0_21 = arith.constant 0 : index
      %c0_22 = arith.constant 0 : index
      %c0_23 = arith.constant 0 : index
      %18 = vector.load %arg5[%c0_21, %c0_22, %c0_23] : memref<1x4x1xf32, #tpu.memory_space<vmem>>, vector<1x4x1xf32>
      tpu.vector_store %arg5[%c0_21, %c0_22, %c0_23], %17 {strides = array<i32>} : memref<1x4x1xf32, #tpu.memory_space<vmem>>, vector<1x4x1xf32>,
    } else {
    }
    %c0 = arith.constant 0 : index
    %c0_1 = arith.constant 0 : index
    %c0_2 = arith.constant 0 : index
    %3 = vector.load %arg3[%c0, %c0_1, %c0_2] : memref<2x4x256xf32, #tpu.memory_space<vmem>>, vector<2x4x256xf32>
    %c0_3 = arith.constant 0 : index
    %c0_4 = arith.constant 0 : index
    %c0_5 = arith.constant 0 : index
    %4 = vector.load %arg4[%c0_3, %c0_4, %c0_5] : memref<1x4x1xf32, #tpu.memory_space<vmem>>, vector<1x4x1xf32>
    %cst = arith.constant dense<0.000000e+00> : vector<4xf32>
    %5 = vector.multi_reduction <add>, %3, %cst [0, 2] : vector<2x4x256xf32> to vector<4xf32>
    %6 = vector.shape_cast %5 : vector<4xf32> to vector<1x4x1xf32>
    %7 = arith.addf %4, %6 : vector<1x4x1xf32>
    %c0_6 = arith.constant 0 : index
    %c0_7 = arith.constant 0 : index
    %c0_8 = arith.constant 0 : index
    %8 = vector.load %arg4[%c0_6, %c0_7, %c0_8] : memref<1x4x1xf32, #tpu.memory_space<vmem>>, vector<1x4x1xf32>
    tpu.vector_store %arg4[%c0_6, %c0_7, %c0_8], %7 {strides = array<i32>} : memref<1x4x1xf32, #tpu.memory_space<vmem>>, vector<1x4x1xf32>,
    %c0_9 = arith.constant 0 : index
    %c0_10 = arith.constant 0 : index
    %c0_11 = arith.constant 0 : index
    %9 = vector.load %arg5[%c0_9, %c0_10, %c0_11] : memref<1x4x1xf32, #tpu.memory_space<vmem>>, vector<1x4x1xf32>
    %10 = arith.mulf %3, %3 : vector<2x4x256xf32>
    %cst_12 = arith.constant dense<0.000000e+00> : vector<4xf32>
    %11 = vector.multi_reduction <add>, %10, %cst_12 [0, 2] : vector<2x4x256xf32> to vector<4xf32>
    %12 = vector.shape_cast %11 : vector<4xf32> to vector<1x4x1xf32>
    %13 = arith.addf %9, %12 : vector<1x4x1xf32>
    %c0_13 = arith.constant 0 : index
    %c0_14 = arith.constant 0 : index
    %c0_15 = arith.constant 0 : index
    %14 = vector.load %arg5[%c0_13, %c0_14, %c0_15] : memref<1x4x1xf32, #tpu.memory_space<vmem>>, vector<1x4x1xf32>
    tpu.vector_store %arg5[%c0_13, %c0_14, %c0_15], %13 {strides = array<i32>} : memref<1x4x1xf32, #tpu.memory_space<vmem>>, vector<1x4x1xf32>,
    return
  }
  func.func @transform_0(%arg0: i32, %arg1: i32, %arg2: i32) -> (i32, i32, i32) {
    %c0_i32 = arith.constant 0 : i32
    return %arg0, %arg1, %arg2 : i32, i32, i32
  }
  func.func @transform_1(%arg0: i32, %arg1: i32, %arg2: i32) -> (i32, i32, i32) {
    %c0_i32 = arith.constant 0 : i32
    %c0_i32_0 = arith.constant 0 : i32
    return %arg0, %arg1, %c0_i32 : i32, i32, i32
  }
  func.func @transform_2(%arg0: i32, %arg1: i32, %arg2: i32) -> (i32, i32, i32) {
    %c0_i32 = arith.constant 0 : i32
    %c0_i32_0 = arith.constant 0 : i32
    return %arg0, %arg1, %c0_i32 : i32, i32, i32
  }
}

</mosaic_0001>

<bundles_post_ra>
// kernel: tpu_custom_call.1
= control target key start
LH: loop header
LB: loop body
LE: loop exit
PB: predicated region body
PF: predicated region fallthrough
CT: control target
= control target key end

     0   :  { %8 = vsyncpa [#allocation3], 0  ;;  %s112_s9 = smov [#allocation2]   ;;  %s173_s0 = inlined_call_operand.hbm [shape: f32[2,4,256], index: 0, kind: input, shape index: {}]   ;;  %s174_s1 = inlined_call_operand.vmem [shape: f32[1,4,1], index: 1, kind: output, shape index: {0}]   ;;  %s175_s2 = inlined_call_operand.vmem [shape: f32[1,4,1], index: 2, kind: output, shape index: {1}]  }
   0x1   :  { %s14_s10 = sshll.u32 %s112_s9, 4  ;;  %s88_s13 = scalar_lea.hbm %s173_s0, 256  ;;  %s15_s10 = int_to_ptr.vmem [resolvable:$true] %s14_s10 }
   0x2   :  { %p89_p0 = scmp.ne.s32.totalorder %s173_s0, %s88_s13  ;;  %p92_p1 = scmp.lt.u32.totalorder %s88_s13, %s173_s0 }
   0x4   :  { %p94_p2 = pnand %p92_p1, %p89_p0 }
   0x6   :  { %97 = shalt.err (!%p94_p2)
}
   0x7   :  { %s98_s18 = scalar_lea.vmem %s15_s10, 256  ;;  %p103_p4 = scmp.lt.s32.totalorder %s15_s10, %s15_s10 }
   0x8   :  { %p99_p3 = scmp.ne.s32.totalorder %s15_s10, %s98_s18  ;;  %p104_p5 = scmp.lt.s32.totalorder %s98_s18, %s98_s18 }
   0xa   :  { %p105_p6 = por %p104_p5, %p103_p4 }
   0xc   :  { %p106_p7 = pnand %p105_p6, %p99_p3 }
   0xe   :  { %109 = shalt.err (!%p106_p7)
}
   0xf   :  { %s113_s19 = smov 128   ;;  %s114_s20 = smov 8  }
  0x10   :  { %20 = dma.hbm_to_vmem [thread:$0]  %s173_s0, 256, %s15_s10, [#allocation3], %s113_s19, %s113_s19, %s114_s20  }
  0x11   :  { %110 = dma.done.wait [#allocation3], 256  }
  0x12   :  { %111 = vsyncadd [#allocation3], 4294967040  ;;  %vm28_vm0 = vcmask 3072   ;;  %v115_v0 = vmov 0.0   ;;  %vm40_vm1 = vcmask 1043456   ;;  %v31_v1 = vld [vmem:[#allocation2] sm:$0xff] }
  0x13   :  { %29 = vst.msk [vmem:[%s174_s1] sm:$0xf] %vm28_vm0, %v115_v0  ;;  %30 = vst.msk [vmem:[%s175_s2] sm:$0xf] %vm28_vm0, %v115_v0  ;;  %v32_v2 = vld [vmem:[#allocation2 + $0x8] sm:$0xff]  ;;  %v36_v3 = vcombine.high %v31_v1, %v31_v1  ;;  %v41_v5 = vsel %vm40_vm1, %v31_v1, 0.0  ;;  %v54_v6 = vmul.f32 %v31_v1, %v31_v1 }
  0x14   :  { %v37_v4 = vcombine.high %v32_v2, %v32_v2  ;;  %v55_v7 = vmul.f32 %v32_v2, %v32_v2  ;;  %v44_v9 = vsel %vm40_vm1, %v32_v2, 0.0 }
  0x15   :  { %v42_v8 = vsel %vm40_vm1, %v36_v3, 0.0  ;;  %v58_v11 = vcombine.high %v54_v6, %v54_v6  ;;  %v62_v13 = vsel %vm40_vm1, %v54_v6, 0.0 }
  0x16   :  { %v43_v10 = vadd.f32 %v42_v8, %v41_v5  ;;  %v59_v12 = vcombine.high %v55_v7, %v55_v7  ;;  %v46_v14 = vsel %vm40_vm1, %v37_v4, 0.0  ;;  %v65_v17 = vsel %vm40_vm1, %v55_v7, 0.0 }
  0x17   :  { %v63_v16 = vsel %vm40_vm1, %v58_v11, 0.0 }
  0x18   :  { %v45_v15 = vadd.f32 %v44_v9, %v43_v10  ;;  %v64_v18 = vadd.f32 %v63_v16, %v62_v13  ;;  %v67_v20 = vsel %vm40_vm1, %v59_v12, 0.0 }
  0x1a   :  { %v47_v19 = vadd.f32 %v46_v14, %v45_v15  ;;  %v66_v21 = vadd.f32 %v65_v17, %v64_v18  ;;  %v33_v23 = vld [vmem:[%s174_s1] sm:$0xf] }
  0x1b   :  { %v53_v26 = vld [vmem:[%s175_s2] sm:$0xf] }
  0x1c   :  { %48 = vadd.xlane.f32.xlu0 %v47_v19  ;;  %v68_v22 = vadd.f32 %v67_v20, %v66_v21 }
  0x20   :  { %69 = vadd.xlane.f32.xlu0 %v68_v22 }
  0xa9   :  { %v49_v24 = vpop.xlane.xlu0 %48 }
  0xaa   :  { %v50_v25 = vadd.f32 %v49_v24, %v33_v23 }
  0xac   :  { %52 = vst.msk [vmem:[%s174_s1] sm:$0xf] %vm28_vm0, %v50_v25 }
  0xad   :  { %v70_v27 = vpop.xlane.xlu0 %69 }
  0xae   :  { %v71_v28 = vadd.f32 %v70_v27, %v53_v26 }
  0xb0   :  { %72 = vst.msk [vmem:[%s175_s2] sm:$0xf] %vm28_vm0, %v71_v28 }
  0xb1   :  { %81 = vsyncpa [#allocation3], 1 }

</bundles_post_ra>
